<compile_context>
chip_gen: v6e
topology: v6e:2x2x1
jax: 0.10.0
libtpu: 0.0.40
codegen_flags: <defaults>
</compile_context>

<pallas_src>
import jax
import jax.numpy as jnp
from jax.experimental import pallas as pl
from jax.experimental.pallas import tpu as pltpu

_LANE = 128  # padded output width -> lane-dense, unmasked output stores


def head_kernel(x_ref, w1_ref, b1_ref, w2_ref, b2_ref, o_ref, h_acc):
    # Grid: (batch tile i, channel chunk j); j is the reduction axis (innermost).
    j = pl.program_id(1)

    @pl.when(j == 0)
    def _():
        h_acc[...] = jnp.zeros_like(h_acc)

    # Global-average-pool as an f32-accumulating sublane SUM (the 1/HW scale is
    # folded into w1 on the wrapper side):
    #   [TILE_B, HW, TILE_C] -> [TILE_B, TILE_C]
    pooled = jnp.sum(x_ref[...], axis=1, dtype=jnp.float32)

    # Partial fc1 on the MXU: bf16 operands, f32 accumulation into scratch.
    h_acc[...] += jnp.dot(pooled.astype(jnp.bfloat16), w1_ref[...],
                          preferred_element_type=jnp.float32)

    @pl.when(j == pl.num_programs(1) - 1)
    def _():
        # fc1 bias + ReLU.  Dropout(p=0.3) is the identity at inference time.
        h = jnp.maximum(h_acc[...] + b1_ref[...], 0.0)
        # fc2 (256 -> num_classes, zero-padded to 128 lanes) + sigmoid.
        logits = jnp.dot(h, w2_ref[...], preferred_element_type=jnp.float32)
        logits = logits + b2_ref[...]
        # sigmoid: exp on the EUP, approximate reciprocal (also off the VPU).
        o_ref[...] = pl.reciprocal(1.0 + jnp.exp(-logits), approx=True)


def custom_model_head(x_nhwc, w1, b1, w2, b2):
    """x_nhwc: [B, H, W, C] feature map from the backbone (channels-last).

    Implements AdaptiveAvgPool2d((1,1)) -> flatten -> fc1 -> ReLU ->
    dropout(eval, identity) -> fc2 -> sigmoid.
    Linear weights are stored transposed as [in, out]; biases as [out].
    """
    B, H, W, C = x_nhwc.shape
    HW = H * W
    hidden = w1.shape[1]
    num_classes = w2.shape[1]

    # ---- wrapper-side layout / dtype plumbing --------------------------------
    # Stream x in its native f32: no standalone cast pass over HBM.  The
    # reshape of a contiguous channels-last array is a pure bitcast.
    x = x_nhwc.reshape(B, HW, C)

    # Fold the 1/HW pooling scale into fc1's weight; feed the MXU bf16.
    w1s = (w1.astype(jnp.float32) / float(HW)).astype(jnp.bfloat16)
    b1_2d = b1.reshape(1, hidden).astype(jnp.float32)
    # Zero-pad fc2 to 128 output lanes for unmasked stores; sliced off below.
    w2p = jnp.zeros((hidden, _LANE), jnp.float32).at[:, :num_classes].set(
        w2.astype(jnp.float32))
    b2p = jnp.zeros((1, _LANE), jnp.float32).at[:, :num_classes].set(
        b2.astype(jnp.float32))

    # ---- tiling ---------------------------------------------------------------
    # Batch tile: once B > 8, keep >= 2 batch tiles so the "parallel" axis can
    # actually be split across the two v7x TensorCores.
    if B <= 8:
        TILE_B = B
    else:
        half = (B + 1) // 2
        TILE_B = min(128, ((half + 7) // 8) * 8)

    # Channel tile: biggest 128-multiple divisor of C (capped at 512 for v7x's
    # 64 MiB VMEM) whose f32 x-block stays under ~14 MiB (28 MiB double-buffered).
    X_BLOCK_BUDGET = 14 * 1024 * 1024
    TILE_C = C
    for cand in (512, 256, 128):
        if C % cand == 0 and TILE_B * HW * cand * 4 <= X_BLOCK_BUDGET:
            TILE_C = cand
            break

    grid = (pl.cdiv(B, TILE_B), C // TILE_C)

    # VMEM budget: double-buffered blocks + f32 accumulator + headroom, clamped
    # well under v7x's 64 MiB physical VMEM (and above v5e's 16 MiB scoped default).
    x_blk = TILE_B * HW * TILE_C * 4
    w1_blk = TILE_C * hidden * 2
    fixed = hidden * 4 + hidden * _LANE * 4 + _LANE * 4 + TILE_B * _LANE * 4
    vmem_need = 2 * (x_blk + w1_blk + fixed) + TILE_B * hidden * 4
    vmem_limit = int(min(max(vmem_need + (4 << 20), 16 << 20), 48 << 20))

    cost = pl.CostEstimate(
        flops=B * HW * C + 2 * B * C * hidden + 2 * B * hidden * _LANE,
        transcendentals=2 * B * _LANE,
        bytes_accessed=int(x.size) * 4
        + int(w1s.size) * 2
        + int(b1_2d.size + w2p.size + b2p.size + B * _LANE) * 4,
    )

    out = pl.pallas_call(
        head_kernel,
        out_shape=jax.ShapeDtypeStruct((B, _LANE), jnp.float32),
        grid=grid,
        in_specs=[
            pl.BlockSpec((TILE_B, HW, TILE_C), lambda i, j: (i, 0, j)),
            pl.BlockSpec((TILE_C, hidden), lambda i, j: (j, 0)),
            pl.BlockSpec((1, hidden), lambda i, j: (0, 0)),
            pl.BlockSpec((hidden, _LANE), lambda i, j: (0, 0)),
            pl.BlockSpec((1, _LANE), lambda i, j: (0, 0)),
        ],
        out_specs=pl.BlockSpec((TILE_B, _LANE), lambda i, j: (i, 0)),
        scratch_shapes=[pltpu.VMEM((TILE_B, hidden), jnp.float32)],
        compiler_params=pltpu.CompilerParams(
            dimension_semantics=("parallel", "arbitrary"),
            vmem_limit_bytes=vmem_limit,
        ),
        cost_estimate=cost,
    )(x, w1s, b1_2d, w2p, b2p)

    return out[:, :num_classes]


def _reference(x_nhwc, w1, b1, w2, b2):
    # Exact f32 forward of the module's head (dropout is identity at eval).
    pooled = jnp.mean(x_nhwc, axis=(1, 2))   # AdaptiveAvgPool2d((1,1)) + flatten
    h = jnp.maximum(pooled @ w1 + b1, 0.0)   # fc1 + ReLU
    logits = h @ w2 + b2                     # fc2
    return 1.0 / (1.0 + jnp.exp(-logits))    # sigmoid


if __name__ == "__main__":
    # Small synthetic shapes consistent with the module's forward:
    # backbone feature map [B, H, W, num_features]; head: num_features->256->2.
    B, C, H, W = 2, 64, 16, 16      # C stands in for densenet's 1024 / resnet's 2048
    HIDDEN, NUM_CLASSES = 256, 2

    key = jax.random.PRNGKey(0)
    kx, k1, k2, k3, k4 = jax.random.split(key, 5)

    x = jax.random.normal(kx, (B, H, W, C), dtype=jnp.float32)

    # Deterministic PyTorch-Linear-style init: U(-1/sqrt(fan_in), 1/sqrt(fan_in)),
    # stored transposed as [in, out].
    lim1 = 1.0 / (C ** 0.5)
    w1 = jax.random.uniform(k1, (C, HIDDEN), minval=-lim1, maxval=lim1, dtype=jnp.float32)
    b1 = jax.random.uniform(k2, (HIDDEN,), minval=-lim1, maxval=lim1, dtype=jnp.float32)
    lim2 = 1.0 / (HIDDEN ** 0.5)
    w2 = jax.random.uniform(k3, (HIDDEN, NUM_CLASSES), minval=-lim2, maxval=lim2, dtype=jnp.float32)
    b2 = jax.random.uniform(k4, (NUM_CLASSES,), minval=-lim2, maxval=lim2, dtype=jnp.float32)

    out = jax.block_until_ready(custom_model_head(x, w1, b1, w2, b2))

    ref = _reference(x, w1, b1, w2, b2)
    assert out.shape == (B, NUM_CLASSES)
    # Tolerance covers bf16 MXU operands for fc1 + approx reciprocal in sigmoid.
    assert jnp.allclose(out, ref, atol=1e-2, rtol=1e-2), "mismatch vs reference"

    print("KERNEL_OK")
</pallas_src>

<mosaic_0001>
module attributes {stable_mosaic.version = 11 : i64} {
  func.func @head_kernel(%arg0: i32, %arg1: i32, %arg2: memref<2x256x64xf32, #tpu.memory_space<vmem>>, %arg3: memref<64x256xbf16, #tpu.memory_space<vmem>>, %arg4: memref<1x256xf32, #tpu.memory_space<vmem>>, %arg5: memref<256x128xf32, #tpu.memory_space<vmem>>, %arg6: memref<1x128xf32, #tpu.memory_space<vmem>>, %arg7: memref<2x128xf32, #tpu.memory_space<vmem>>, %arg8: memref<2x256xf32, #tpu.memory_space<vmem>>) attributes {dimension_semantics = [#tpu.dimension_semantics<parallel>, #tpu.dimension_semantics<arbitrary>], iteration_bounds = array<i64: 1, 1>, scalar_prefetch = 0 : i64, scratch_operands = 1 : i64, tpu.core_type = #tpu.core_type<tc>, window_params = [{transform_indices = @transform_0, window_bounds = array<i64: 2, 256, 64>}, {transform_indices = @transform_1, window_bounds = array<i64: 64, 256>}, {pipeline_mode = #tpu.pipeline_mode<synchronous>, transform_indices = @transform_2, window_bounds = array<i64: 1, 256>}, {pipeline_mode = #tpu.pipeline_mode<synchronous>, transform_indices = @transform_3, window_bounds = array<i64: 256, 128>}, {pipeline_mode = #tpu.pipeline_mode<synchronous>, transform_indices = @transform_4, window_bounds = array<i64: 1, 128>}, {transform_indices = @transform_5, window_bounds = array<i64: 2, 128>}]} {
    %c0_i32 = arith.constant 0 : i32
    %0 = arith.cmpi eq, %arg1, %c0_i32 : i32
    %1 = arith.extui %0 : i1 to i32
    %c0_i32_0 = arith.constant 0 : i32
    %2 = arith.cmpi ne, %1, %c0_i32_0 : i32
    scf.if %2 {
      %cst_12 = arith.constant 0.000000e+00 : f32
      %14 = vector.broadcast %cst_12 : f32 to vector<2x256xf32>
      %c0_13 = arith.constant 0 : index
      %c0_14 = arith.constant 0 : index
      %15 = vector.load %arg8[%c0_13, %c0_14] : memref<2x256xf32, #tpu.memory_space<vmem>>, vector<2x256xf32>
      tpu.vector_store %arg8[%c0_13, %c0_14], %14 {strides = array<i32>} : memref<2x256xf32, #tpu.memory_space<vmem>>, vector<2x256xf32>,
    } else {
    }
    %c0 = arith.constant 0 : index
    %c0_1 = arith.constant 0 : index
    %c0_2 = arith.constant 0 : index
    %3 = vector.load %arg2[%c0, %c0_1, %c0_2] : memref<2x256x64xf32, #tpu.memory_space<vmem>>, vector<2x256x64xf32>
    %cst = arith.constant dense<0.000000e+00> : vector<2x64xf32>
    %4 = vector.multi_reduction <add>, %3, %cst [1] : vector<2x256x64xf32> to vector<2x64xf32>
    %c0_3 = arith.constant 0 : index
    %c0_4 = arith.constant 0 : index
    %5 = vector.load %arg8[%c0_3, %c0_4] : memref<2x256xf32, #tpu.memory_space<vmem>>, vector<2x256xf32>
    %6 = arith.truncf %4 : vector<2x64xf32> to vector<2x64xbf16>
    %c0_5 = arith.constant 0 : index
    %c0_6 = arith.constant 0 : index
    %7 = vector.load %arg3[%c0_5, %c0_6] : memref<64x256xbf16, #tpu.memory_space<vmem>>, vector<64x256xbf16>
    %cst_7 = arith.constant dense<0.000000e+00> : vector<2x256xf32>
    %8 = tpu.matmul %6, %7, %cst_7 {dimension_numbers = #tpu.dot_dimension_numbers<[1], [0], [0], [1], [0, 0, 1, 1], [], []>} : vector<2x64xbf16>, vector<64x256xbf16>, vector<2x256xf32> -> vector<2x256xf32>
    %9 = arith.addf %5, %8 : vector<2x256xf32>
    %c0_8 = arith.constant 0 : index
    %c0_9 = arith.constant 0 : index
    %10 = vector.load %arg8[%c0_8, %c0_9] : memref<2x256xf32, #tpu.memory_space<vmem>>, vector<2x256xf32>
    tpu.vector_store %arg8[%c0_8, %c0_9], %9 {strides = array<i32>} : memref<2x256xf32, #tpu.memory_space<vmem>>, vector<2x256xf32>,
    %c0_i32_10 = arith.constant 0 : i32
    %11 = arith.cmpi eq, %arg1, %c0_i32_10 : i32
    %12 = arith.extui %11 : i1 to i32
    %c0_i32_11 = arith.constant 0 : i32
    %13 = arith.cmpi ne, %12, %c0_i32_11 : i32
    scf.if %13 {
      %c0_12 = arith.constant 0 : index
      %c0_13 = arith.constant 0 : index
      %14 = vector.load %arg8[%c0_12, %c0_13] : memref<2x256xf32, #tpu.memory_space<vmem>>, vector<2x256xf32>
      %c0_14 = arith.constant 0 : index
      %c0_15 = arith.constant 0 : index
      %15 = vector.load %arg4[%c0_14, %c0_15] : memref<1x256xf32, #tpu.memory_space<vmem>>, vector<1x256xf32>
      %16 = vector.broadcast %15 : vector<1x256xf32> to vector<2x256xf32>
      %17 = arith.addf %14, %16 : vector<2x256xf32>
      %cst_16 = arith.constant 0.000000e+00 : f32
      %18 = vector.broadcast %cst_16 : f32 to vector<2x256xf32>
      %19 = arith.maximumf %17, %18 : vector<2x256xf32>
      %c0_17 = arith.constant 0 : index
      %c0_18 = arith.constant 0 : index
      %20 = vector.load %arg5[%c0_17, %c0_18] : memref<256x128xf32, #tpu.memory_space<vmem>>, vector<256x128xf32>
      %cst_19 = arith.constant dense<0.000000e+00> : vector<2x128xf32>
      %21 = tpu.matmul %19, %20, %cst_19 {dimension_numbers = #tpu.dot_dimension_numbers<[1], [0], [0], [1], [0, 0, 1, 1], [], []>} : vector<2x256xf32>, vector<256x128xf32>, vector<2x128xf32> -> vector<2x128xf32>
      %c0_20 = arith.constant 0 : index
      %c0_21 = arith.constant 0 : index
      %22 = vector.load %arg6[%c0_20, %c0_21] : memref<1x128xf32, #tpu.memory_space<vmem>>, vector<1x128xf32>
      %23 = vector.broadcast %22 : vector<1x128xf32> to vector<2x128xf32>
      %24 = arith.addf %21, %23 : vector<2x128xf32>
      %cst_22 = arith.constant 0.000000e+00 : f32
      %25 = vector.broadcast %cst_22 : f32 to vector<2x128xf32>
      %26 = arith.subf %25, %24 : vector<2x128xf32>
      %27 = math.exp %26 : vector<2x128xf32>
      %cst_23 = arith.constant 1.000000e+00 : f32
      %28 = vector.broadcast %cst_23 : f32 to vector<2x128xf32>
      %29 = arith.addf %28, %27 : vector<2x128xf32>
      %30 = tpu.reciprocal %29 {approx = true} : vector<2x128xf32> -> vector<2x128xf32>
      %c0_24 = arith.constant 0 : index
      %c0_25 = arith.constant 0 : index
      %31 = vector.load %arg7[%c0_24, %c0_25] : memref<2x128xf32, #tpu.memory_space<vmem>>, vector<2x128xf32>
      tpu.vector_store %arg7[%c0_24, %c0_25], %30 {strides = array<i32>} : memref<2x128xf32, #tpu.memory_space<vmem>>, vector<2x128xf32>,
    } else {
    }
    return
  }
  func.func @transform_0(%arg0: i32, %arg1: i32) -> (i32, i32, i32) {
    %c0_i32 = arith.constant 0 : i32
    %c0_i32_0 = arith.constant 0 : i32
    return %arg0, %c0_i32, %arg1 : i32, i32, i32
  }
  func.func @transform_1(%arg0: i32, %arg1: i32) -> (i32, i32) {
    %c0_i32 = arith.constant 0 : i32
    %c0_i32_0 = arith.constant 0 : i32
    return %arg1, %c0_i32 : i32, i32
  }
  func.func @transform_2(%arg0: i32, %arg1: i32) -> (i32, i32) {
    %c0_i32 = arith.constant 0 : i32
    %c0_i32_0 = arith.constant 0 : i32
    %c0_i32_1 = arith.constant 0 : i32
    return %c0_i32, %c0_i32_0 : i32, i32
  }
  func.func @transform_3(%arg0: i32, %arg1: i32) -> (i32, i32) {
    %c0_i32 = arith.constant 0 : i32
    %c0_i32_0 = arith.constant 0 : i32
    %c0_i32_1 = arith.constant 0 : i32
    return %c0_i32, %c0_i32_0 : i32, i32
  }
  func.func @transform_4(%arg0: i32, %arg1: i32) -> (i32, i32) {
    %c0_i32 = arith.constant 0 : i32
    %c0_i32_0 = arith.constant 0 : i32
    %c0_i32_1 = arith.constant 0 : i32
    return %c0_i32, %c0_i32_0 : i32, i32
  }
  func.func @transform_5(%arg0: i32, %arg1: i32) -> (i32, i32) {
    %c0_i32 = arith.constant 0 : i32
    %c0_i32_0 = arith.constant 0 : i32
    return %arg0, %c0_i32 : i32, i32
  }
}

</mosaic_0001>

<bundles_post_ra>
// kernel: tpu_custom_call.1
= control target key start
LH: loop header
LB: loop body
LE: loop exit
PB: predicated region body
PF: predicated region fallthrough
CT: control target
= control target key end

     0   :  { %v597_v2 = vmov 0   ;;  %vm91_vm0 = vcmask 523264   ;;  %s1017_s0 = inlined_call_operand.vmem [shape: f32[2,256,64], index: 0, kind: input, shape index: {}]   ;;  %s1018_s1 = inlined_call_operand.vmem [shape: bf16[64,256], index: 1, kind: input, shape index: {}]   ;;  %s1019_s2 = inlined_call_operand.vmem [shape: f32[1,256], index: 2, kind: input, shape index: {}]   ;;  %s1020_s3 = inlined_call_operand.vmem [shape: f32[256,128], index: 3, kind: input, shape index: {}]   ;;  %s1021_s4 = inlined_call_operand.vmem [shape: f32[1,128], index: 4, kind: input, shape index: {}]   ;;  %s1022_s5 = inlined_call_operand.hbm [shape: f32[2,128], index: 5, kind: output, shape index: {}]  }
   0x1   :  { %v559_v0 = vld [vmem:[%s1018_s1 + $0x34] ss:$8 sps:$4 sm:$0xff]   ;;  %v561_v1 = vld [vmem:[%s1018_s1 + $0x30] ss:$8 sps:$4 sm:$0xff]   ;;  %323 = vmatprep.mubr.bf16.mxu0 %v597_v2  ;;  %v562_v3 = vld [vmem:[%s1018_s1 + $0x24] ss:$8 sps:$4 sm:$0xff]  }
   0x2   :  { %299 = vmatprep.subr.bf16.mxu0 %v559_v0  ;;  %v564_v4 = vld [vmem:[%s1018_s1 + $0x20] ss:$8 sps:$4 sm:$0xff]   ;;  %v565_v5 = vld [vmem:[%s1018_s1 + $0x14] ss:$8 sps:$4 sm:$0xff]   ;;  %v567_v12 = vld [vmem:[%s1018_s1 + $0x10] ss:$8 sps:$4 sm:$0xff]  }
   0x3   :  { %300 = vmatpush1.bf16.msra.mxu0 %v561_v1  ;;  %v27_v6 = vld [vmem:[%s1017_s0] sm:$0xff]  ;;  %v28_v7 = vld [vmem:[%s1017_s0 + $0x8] sm:$0xff]  ;;  %v29_v8 = vld [vmem:[%s1017_s0 + $0x10] sm:$0xff] }
   0x4   :  { %301 = vmatprep.subr.bf16.mxu0 %v562_v3  ;;  %v30_v9 = vld [vmem:[%s1017_s0 + $0x18] sm:$0xff]  ;;  %v92_v10 = vsel %vm91_vm0, %v27_v6, 0.0  ;;  %v93_v11 = vsel %vm91_vm0, %v28_v7, 0.0  ;;  %v31_v13 = vld [vmem:[%s1017_s0 + $0x20] sm:$0xff]  ;;  %v95_v15 = vsel %vm91_vm0, %v29_v8, 0.0  ;;  %v32_v18 = vld [vmem:[%s1017_s0 + $0x28] sm:$0xff] }
   0x5   :  { %v94_v14 = vadd.f32 %v93_v11, %v92_v10  ;;  %v568_v16 = vld [vmem:[%s1018_s1 + $0x4] ss:$8 sps:$4 sm:$0xff]   ;;  %v97_v17 = vsel %vm91_vm0, %v30_v9, 0.0  ;;  %v99_v20 = vsel %vm91_vm0, %v31_v13, 0.0  ;;  %v570_v21 = vld [vmem:[%s1018_s1] ss:$8 sps:$4 sm:$0xff]  }
   0x6   :  { %v33_v22 = vld [vmem:[%s1017_s0 + $0x30] sm:$0xff]  ;;  %v101_v24 = vsel %vm91_vm0, %v32_v18, 0.0  ;;  %v34_v25 = vld [vmem:[%s1017_s0 + $0x38] sm:$0xff]  ;;  %v35_v28 = vld [vmem:[%s1017_s0 + $0x40] sm:$0xff] }
   0x7   :  { %302 = vmatpush1.bf16.msra.mxu0 %v564_v4  ;;  %v96_v19 = vadd.f32 %v95_v15, %v94_v14  ;;  %v103_v27 = vsel %vm91_vm0, %v33_v22, 0.0  ;;  %v59_v30 = vld [vmem:[%s1017_s0 + $0x100] sm:$0xff]  ;;  %v60_v31 = vld [vmem:[%s1017_s0 + $0x108] sm:$0xff]  ;;  %v61_v32 = vld [vmem:[%s1017_s0 + $0x110] sm:$0xff]  ;;  %v105_v33 = vsel %vm91_vm0, %v34_v25, 0.0  ;;  %v107_v41 = vsel %vm91_vm0, %v35_v28, 0.0 }
   0x8   :  { %303 = vmatprep.subr.bf16.mxu0 %v565_v5  ;;  %v36_v34 = vld [vmem:[%s1017_s0 + $0x48] sm:$0xff]  ;;  %v62_v35 = vld [vmem:[%s1017_s0 + $0x118] sm:$0xff]  ;;  %v161_v37 = vsel %vm91_vm0, %v59_v30, 0.0  ;;  %v162_v38 = vsel %vm91_vm0, %v60_v31, 0.0  ;;  %v164_v39 = vsel %vm91_vm0, %v61_v32, 0.0  ;;  %v63_v40 = vld [vmem:[%s1017_s0 + $0x120] sm:$0xff] }
   0x9   :  { %v98_v23 = vadd.f32 %v97_v17, %v96_v19  ;;  %v163_v42 = vadd.f32 %v162_v38, %v161_v37  ;;  %v37_v43 = vld [vmem:[%s1017_s0 + $0x50] sm:$0xff]  ;;  %v166_v45 = vsel %vm91_vm0, %v62_v35, 0.0  ;;  %v64_v46 = vld [vmem:[%s1017_s0 + $0x128] sm:$0xff]  ;;  %v109_v47 = vsel %vm91_vm0, %v36_v34, 0.0  ;;  %v38_v49 = vld [vmem:[%s1017_s0 + $0x58] sm:$0xff] }
   0xa   :  { %v168_v51 = vsel %vm91_vm0, %v63_v40, 0.0  ;;  %v65_v52 = vld [vmem:[%s1017_s0 + $0x130] sm:$0xff]  ;;  %v111_v53 = vsel %vm91_vm0, %v37_v43, 0.0  ;;  %v39_v55 = vld [vmem:[%s1017_s0 + $0x60] sm:$0xff]  ;;  %v170_v57 = vsel %vm91_vm0, %v64_v46, 0.0  ;;  %v66_v58 = vld [vmem:[%s1017_s0 + $0x138] sm:$0xff] }
   0xb   :  { %304 = vmatpush1.bf16.msra.mxu0 %v567_v12  ;;  %v100_v26 = vadd.f32 %v99_v20, %v98_v23  ;;  %v165_v48 = vadd.f32 %v164_v39, %v163_v42  ;;  %v113_v59 = vsel %vm91_vm0, %v38_v49, 0.0  ;;  %v40_v61 = vld [vmem:[%s1017_s0 + $0x68] sm:$0xff]  ;;  %v172_v63 = vsel %vm91_vm0, %v65_v52, 0.0  ;;  %v41_v0 = vld [vmem:[%s1017_s0 + $0x70] sm:$0xff]  ;;  %v67_v1 = vld [vmem:[%s1017_s0 + $0x140] sm:$0xff] }
   0xc   :  { %305 = vmatprep.subr.bf16.mxu0 %v568_v16  ;;  %v115_v2 = vsel %vm91_vm0, %v39_v55, 0.0  ;;  %v401_v4 = vld [vmem:[%s1020_s3 + $0xf8] sm:$0xff]  ;;  %v174_v6 = vsel %vm91_vm0, %v66_v58, 0.0  ;;  %v400_v8 = vld [vmem:[%s1020_s3 + $0xf0] sm:$0xff]  ;;  %v68_v10 = vld [vmem:[%s1017_s0 + $0x148] sm:$0xff]  ;;  %v117_v11 = vsel %vm91_vm0, %v40_v61, 0.0 }
   0xd   :  { %v102_v29 = vadd.f32 %v101_v24, %v100_v26  ;;  %v167_v54 = vadd.f32 %v166_v45, %v165_v48  ;;  %520 = vmatprep.subr.mxu1 %v401_v4  ;;  %v385_v7 = vld [vmem:[%s1020_s3 + $0x78] sm:$0xff]  ;;  %v384_v9 = vld [vmem:[%s1020_s3 + $0x70] sm:$0xff]  ;;  %v399_v13 = vld [vmem:[%s1020_s3 + $0xe8] sm:$0xff] }
   0xe   :  { %521 = vmatpush3.msra.mxu1 %v385_v7 }
   0xf   :  { %306 = vmatpush1.bf16.msra.mxu0 %v570_v21  ;;  %v104_v36 = vadd.f32 %v103_v27, %v102_v29  ;;  %v169_v60 = vadd.f32 %v168_v51, %v167_v54 }
  0x11   :  { %v106_v44 = vadd.f32 %v105_v33, %v104_v36  ;;  %v171_v3 = vadd.f32 %v170_v57, %v169_v60 }
  0x13   :  { %v108_v50 = vadd.f32 %v107_v41, %v106_v44  ;;  %v173_v12 = vadd.f32 %v172_v63, %v171_v3 }
  0x15   :  { %v110_v56 = vadd.f32 %v109_v47, %v108_v50 }
  0x17   :  { %v112_v62 = vadd.f32 %v111_v53, %v110_v56 }
  0x19   :  { %v114_v5 = vadd.f32 %v113_v59, %v112_v62 }
  0x1a   :  { %10 = vsyncpa [#allocation4], 0  ;;  %v42_v14 = vld [vmem:[%s1017_s0 + $0x78] sm:$0xff]  ;;  %v176_v16 = vsel %vm91_vm0, %v67_v1, 0.0  ;;  %522 = vmatprep.subr.mxu1 %v400_v8  ;;  %v383_v17 = vld [vmem:[%s1020_s3 + $0x68] sm:$0xff]  ;;  %v119_v19 = vsel %vm91_vm0, %v41_v0, 0.0  ;;  %v175_v20 = vadd.f32 %v174_v6, %v173_v12 }
  0x1b   :  { %v116_v15 = vadd.f32 %v115_v2, %v114_v5  ;;  %v69_v18 = vld [vmem:[%s1017_s0 + $0x150] sm:$0xff]  ;;  %523 = vmatpush3.msra.mxu1 %v384_v9  ;;  %v43_v21 = vld [vmem:[%s1017_s0 + $0x80] sm:$0xff]  ;;  %v178_v23 = vsel %vm91_vm0, %v68_v10, 0.0  ;;  %v70_v24 = vld [vmem:[%s1017_s0 + $0x158] sm:$0xff]  ;;  %v121_v25 = vsel %vm91_vm0, %v42_v14, 0.0  ;;  %vm245_vm1 = vcmask 1041409  }
  0x1c   :  { %524 = vmatprep.subr.mxu1 %v399_v13  ;;  %v177_v26 = vadd.f32 %v176_v16, %v175_v20  ;;  %v44_v27 = vld [vmem:[%s1017_s0 + $0x88] sm:$0xff]  ;;  %v180_v29 = vsel %vm91_vm0, %v69_v18, 0.0  ;;  %v71_v30 = vld [vmem:[%s1017_s0 + $0x160] sm:$0xff]  ;;  %v123_v31 = vsel %vm91_vm0, %v43_v21, 0.0  ;;  %v45_v33 = vld [vmem:[%s1017_s0 + $0x90] sm:$0xff]  ;;  %v182_v35 = vsel %vm91_vm0, %v70_v24, 0.0 }
  0x1d   :  { %v118_v22 = vadd.f32 %v117_v11, %v116_v15  ;;  %525 = vmatpush3.msra.mxu1 %v383_v17  ;;  %v72_v36 = vld [vmem:[%s1017_s0 + $0x168] sm:$0xff]  ;;  %v125_v37 = vsel %vm91_vm0, %v44_v27, 0.0  ;;  %v46_v39 = vld [vmem:[%s1017_s0 + $0x98] sm:$0xff]  ;;  %v184_v41 = vsel %vm91_vm0, %v71_v30, 0.0  ;;  %v73_v42 = vld [vmem:[%s1017_s0 + $0x170] sm:$0xff]  ;;  %v127_v43 = vsel %vm91_vm0, %v45_v33, 0.0 }
  0x1e   :  { %v179_v32 = vadd.f32 %v178_v23, %v177_v26  ;;  %v47_v45 = vld [vmem:[%s1017_s0 + $0xa0] sm:$0xff]  ;;  %v186_v47 = vsel %vm91_vm0, %v72_v36, 0.0  ;;  %v74_v48 = vld [vmem:[%s1017_s0 + $0x178] sm:$0xff]  ;;  %v129_v49 = vsel %vm91_vm0, %v46_v39, 0.0  ;;  %v48_v51 = vld [vmem:[%s1017_s0 + $0xa8] sm:$0xff]  ;;  %v188_v53 = vsel %vm91_vm0, %v73_v42, 0.0 }
  0x1f   :  { %v120_v28 = vadd.f32 %v119_v19, %v118_v22  ;;  %v75_v54 = vld [vmem:[%s1017_s0 + $0x180] sm:$0xff]  ;;  %v131_v55 = vsel %vm91_vm0, %v47_v45, 0.0  ;;  %v49_v57 = vld [vmem:[%s1017_s0 + $0xb0] sm:$0xff]  ;;  %v190_v59 = vsel %vm91_vm0, %v74_v48, 0.0  ;;  %v76_v60 = vld [vmem:[%s1017_s0 + $0x188] sm:$0xff]  ;;  %v133_v61 = vsel %vm91_vm0, %v48_v51, 0.0 }
  0x20   :  { %v181_v38 = vadd.f32 %v180_v29, %v179_v32  ;;  %v50_v63 = vld [vmem:[%s1017_s0 + $0xb8] sm:$0xff]  ;;  %v192_v1 = vsel %vm91_vm0, %v75_v54, 0.0  ;;  %v77_v2 = vld [vmem:[%s1017_s0 + $0x190] sm:$0xff]  ;;  %v135_v3 = vsel %vm91_vm0, %v49_v57, 0.0  ;;  %v51_v5 = vld [vmem:[%s1017_s0 + $0xc0] sm:$0xff]  ;;  %v194_v7 = vsel %vm91_vm0, %v76_v60, 0.0 }
  0x21   :  { %v122_v34 = vadd.f32 %v121_v25, %v120_v28  ;;  %v78_v8 = vld [vmem:[%s1017_s0 + $0x198] sm:$0xff]  ;;  %v137_v9 = vsel %vm91_vm0, %v50_v63, 0.0  ;;  %v52_v11 = vld [vmem:[%s1017_s0 + $0xc8] sm:$0xff]  ;;  %v196_v13 = vsel %vm91_vm0, %v77_v2, 0.0  ;;  %v79_v14 = vld [vmem:[%s1017_s0 + $0x1a0] sm:$0xff]  ;;  %v139_v15 = vsel %vm91_vm0, %v51_v5, 0.0 }
  0x22   :  { %v183_v44 = vadd.f32 %v182_v35, %v181_v38  ;;  %v53_v17 = vld [vmem:[%s1017_s0 + $0xd0] sm:$0xff]  ;;  %v198_v19 = vsel %vm91_vm0, %v78_v8, 0.0  ;;  %v80_v20 = vld [vmem:[%s1017_s0 + $0x1a8] sm:$0xff]  ;;  %v141_v21 = vsel %vm91_vm0, %v52_v11, 0.0  ;;  %v54_v23 = vld [vmem:[%s1017_s0 + $0xd8] sm:$0xff]  ;;  %v200_v25 = vsel %vm91_vm0, %v79_v14, 0.0 }
  0x23   :  { %v124_v40 = vadd.f32 %v123_v31, %v122_v34  ;;  %v81_v26 = vld [vmem:[%s1017_s0 + $0x1b0] sm:$0xff]  ;;  %v143_v27 = vsel %vm91_vm0, %v53_v17, 0.0  ;;  %v55_v29 = vld [vmem:[%s1017_s0 + $0xe0] sm:$0xff]  ;;  %v202_v31 = vsel %vm91_vm0, %v80_v20, 0.0  ;;  %v82_v32 = vld [vmem:[%s1017_s0 + $0x1b8] sm:$0xff]  ;;  %v145_v33 = vsel %vm91_vm0, %v54_v23, 0.0 }
  0x24   :  { %v185_v50 = vadd.f32 %v184_v41, %v183_v44  ;;  %v56_v35 = vld [vmem:[%s1017_s0 + $0xe8] sm:$0xff]  ;;  %v83_v38 = vld [vmem:[%s1017_s0 + $0x1c0] sm:$0xff]  ;;  %v147_v39 = vsel %vm91_vm0, %v55_v29, 0.0  ;;  %v57_v41 = vld [vmem:[%s1017_s0 + $0xf0] sm:$0xff] }
  0x25   :  { %v126_v46 = vadd.f32 %v125_v37, %v124_v40  ;;  %v204_v37 = vsel %vm91_vm0, %v81_v26, 0.0  ;;  %v84_v44 = vld [vmem:[%s1017_s0 + $0x1c8] sm:$0xff]  ;;  %v149_v45 = vsel %vm91_vm0, %v56_v35, 0.0  ;;  %v151_v51 = vsel %vm91_vm0, %v57_v41, 0.0  ;;  %v87_v60 = vld [vmem:[%s1017_s0 + $0x1e0] sm:$0xff]  ;;  %v90_v8 = vld [vmem:[%s1017_s0 + $0x1f8] sm:$0xff] }
  0x26   :  { %v187_v56 = vadd.f32 %v186_v47, %v185_v50  ;;  %v58_v47 = vld [vmem:[%s1017_s0 + $0xf8] sm:$0xff]  ;;  %v85_v50 = vld [vmem:[%s1017_s0 + $0x1d0] sm:$0xff]  ;;  %v210_v54 = vsel %vm91_vm0, %v84_v44, 0.0  ;;  %v378_v41 = vld [vmem:[%s1020_s3 + $0x40] sm:$0xff] }
  0x27   :  { %v128_v52 = vadd.f32 %v127_v43, %v126_v46  ;;  %v206_v43 = vsel %vm91_vm0, %v82_v32, 0.0  ;;  %v598_v32 = vmov 0.0   ;;  %v381_v35 = vld [vmem:[%s1020_s3 + $0x58] sm:$0xff]  ;;  %v392_v44 = vld [vmem:[%s1020_s3 + $0xb0] sm:$0xff] }
  0x28   :  { %v189_v62 = vadd.f32 %v188_v53, %v187_v56  ;;  %v153_v56 = vsel %vm91_vm0, %v58_v47, 0.0  ;;  %26 = vst [vmem:[#allocation2] sm:$0xf] %v598_v32  ;;  %v375_v47 = vld [vmem:[%s1020_s3 + $0x28] sm:$0xff] }
  0x29   :  { %v130_v58 = vadd.f32 %v129_v49, %v128_v52  ;;  %v208_v49 = vsel %vm91_vm0, %v83_v38, 0.0  ;;  %v395_v38 = vld [vmem:[%s1020_s3 + $0xc8] sm:$0xff] }
  0x2a   :  { %v191_v4 = vadd.f32 %v190_v59, %v189_v62  ;;  %v212_v59 = vsel %vm91_vm0, %v85_v50, 0.0  ;;  %v389_v50 = vld [vmem:[%s1020_s3 + $0x98] sm:$0xff] }
  0x2b   :  { %v132_v0 = vadd.f32 %v131_v55, %v130_v58  ;;  %v86_v55 = vld [vmem:[%s1017_s0 + $0x1d8] sm:$0xff] }
  0x2c   :  { %v193_v10 = vadd.f32 %v192_v1, %v191_v4  ;;  %v214_v63 = vsel %vm91_vm0, %v86_v55, 0.0  ;;  %v89_v4 = vld [vmem:[%s1017_s0 + $0x1f0] sm:$0xff]  ;;  %v371_v55 = vld [vmem:[%s1020_s3 + $0x8] sm:$0xff] }
  0x2d   :  { %v134_v6 = vadd.f32 %v133_v61, %v132_v0  ;;  %v88_v0 = vld [vmem:[%s1017_s0 + $0x1e8] sm:$0xff]  ;;  %v220_v11 = vsel %vm91_vm0, %v89_v4, 0.0  ;;  %v349_v4 = vld [vmem:[%s1019_s2] sm:$0x3]  ;;  %s600_s0 = smov [#allocation3]  }
  0x2e   :  { %v195_v16 = vadd.f32 %v194_v7, %v193_v10  ;;  %v218_v7 = vsel %vm91_vm0, %v88_v0, 0.0  ;;  %s502_s19 = sshll.u32 %s600_s0, 4  ;;  %s503_s19 = int_to_ptr.vmem [resolvable:$true] %s502_s19 }
  0x2f   :  { %v136_v12 = vadd.f32 %v135_v3, %v134_v6  ;;  %v216_v3 = vsel %vm91_vm0, %v87_v60, 0.0  ;;  %v338_v60 = vlaneseq  ;;  %s575_s20 = scalar_lea.vmem %s503_s19, 32  ;;  %p580_p1 = scmp.lt.s32.totalorder %s503_s19, %s503_s19 }
  0x30   :  { %v197_v22 = vadd.f32 %v196_v13, %v195_v16  ;;  %v222_v13 = vsel %vm91_vm0, %v90_v8, 0.0  ;;  %p576_p0 = scmp.ne.s32.totalorder %s503_s19, %s575_s20  ;;  %p581_p2 = scmp.lt.s32.totalorder %s575_s20, %s575_s20 }
  0x31   :  { %v138_v18 = vadd.f32 %v137_v9, %v136_v12 }
  0x32   :  { %v199_v28 = vadd.f32 %v198_v19, %v197_v22  ;;  %p582_p3 = por %p581_p2, %p580_p1 }
  0x33   :  { %v140_v24 = vadd.f32 %v139_v15, %v138_v18 }
  0x34   :  { %v201_v34 = vadd.f32 %v200_v25, %v199_v28  ;;  %p583_p4 = pnand %p582_p3, %p576_p0 }
  0x35   :  { %v142_v30 = vadd.f32 %v141_v21, %v140_v24 }
  0x36   :  { %v203_v40 = vadd.f32 %v202_v31, %v201_v34  ;;  %v398_v31 = vld [vmem:[%s1020_s3 + $0xe0] sm:$0xff]  ;;  %v397_v34 = vld [vmem:[%s1020_s3 + $0xd8] sm:$0xff] }
  0x37   :  { %v144_v36 = vadd.f32 %v143_v27, %v142_v30  ;;  %526 = vmatprep.subr.mxu1 %v398_v31 }
  0x38   :  { %v205_v46 = vadd.f32 %v204_v37, %v203_v40  ;;  %v380_v37 = vld [vmem:[%s1020_s3 + $0x50] sm:$0xff]  ;;  %v394_v40 = vld [vmem:[%s1020_s3 + $0xc0] sm:$0xff] }
  0x39   :  { %v146_v42 = vadd.f32 %v145_v33, %v144_v36  ;;  %v382_v33 = vld [vmem:[%s1020_s3 + $0x60] sm:$0xff]  ;;  %v396_v36 = vld [vmem:[%s1020_s3 + $0xd0] sm:$0xff] }
  0x3a   :  { %v207_v52 = vadd.f32 %v206_v43, %v205_v46  ;;  %527 = vmatpush3.msra.mxu1 %v382_v33  ;;  %v377_v43 = vld [vmem:[%s1020_s3 + $0x38] sm:$0xff]  ;;  %v391_v46 = vld [vmem:[%s1020_s3 + $0xa8] sm:$0xff] }
  0x3b   :  { %v148_v48 = vadd.f32 %v147_v39, %v146_v42  ;;  %528 = vmatprep.subr.mxu1 %v397_v34  ;;  %v379_v39 = vld [vmem:[%s1020_s3 + $0x48] sm:$0xff]  ;;  %v393_v42 = vld [vmem:[%s1020_s3 + $0xb8] sm:$0xff] }
  0x3c   :  { %v209_v57 = vadd.f32 %v208_v49, %v207_v52  ;;  %529 = vmatpush3.msra.mxu1 %v381_v35  ;;  %v374_v49 = vld [vmem:[%s1020_s3 + $0x20] sm:$0xff]  ;;  %v388_v52 = vld [vmem:[%s1020_s3 + $0x90] sm:$0xff] }
  0x3d   :  { %v150_v53 = vadd.f32 %v149_v45, %v148_v48  ;;  %530 = vmatprep.subr.mxu1 %v396_v36  ;;  %v376_v45 = vld [vmem:[%s1020_s3 + $0x30] sm:$0xff]  ;;  %v390_v48 = vld [vmem:[%s1020_s3 + $0xa0] sm:$0xff] }
  0x3e   :  { %v211_v61 = vadd.f32 %v210_v54, %v209_v57  ;;  %531 = vmatpush3.msra.mxu1 %v380_v37  ;;  %v387_v54 = vld [vmem:[%s1020_s3 + $0x88] sm:$0xff]  ;;  %v370_v57 = vld [vmem:[%s1020_s3] sm:$0xff] }
  0x3f   :  { %v152_v58 = vadd.f32 %v151_v51, %v150_v53  ;;  %532 = vmatprep.subr.mxu1 %v395_v38  ;;  %v373_v51 = vld [vmem:[%s1020_s3 + $0x18] sm:$0xff]  ;;  %v372_v53 = vld [vmem:[%s1020_s3 + $0x10] sm:$0xff] }
  0x40   :  { %v213_v1 = vadd.f32 %v212_v59, %v211_v61  ;;  %533 = vmatpush3.msra.mxu1 %v379_v39 }
  0x41   :  { %v154_v62 = vadd.f32 %v153_v56, %v152_v58  ;;  %534 = vmatprep.subr.mxu1 %v394_v40  ;;  %v386_v56 = vld [vmem:[%s1020_s3 + $0x80] sm:$0xff]  ;;  %v599_v58 = vmov 1983009808  }
  0x42   :  { %v215_v5 = vadd.f32 %v214_v63, %v213_v1  ;;  %535 = vmatpush3.msra.mxu1 %v378_v41  ;;  %v336_v59 = vunpack.c.l.s4 %v599_v58 }
  0x43   :  { %v155_v2 = vrot.slane %v154_v62, 4  ;;  %536 = vmatprep.subr.mxu1 %v393_v42 }
  0x44   :  { %v217_v9 = vadd.f32 %v216_v3, %v215_v5  ;;  %537 = vmatpush3.msra.mxu1 %v377_v43  ;;  %v337_v61 = vunpack.c.0.s8 %v336_v59 }
  0x45   :  { %v156_v6 = vadd.f32 %v155_v2, %v154_v62  ;;  %538 = vmatprep.subr.mxu1 %v392_v44  ;;  %v339_v62 = vshrl.u32 %v338_v60, 7 }
  0x46   :  { %v219_v12 = vadd.f32 %v218_v7, %v217_v9  ;;  %539 = vmatpush3.msra.mxu1 %v376_v45 }
  0x47   :  { %v157_v10 = vrot.slane %v156_v6, 2  ;;  %540 = vmatprep.subr.mxu1 %v391_v46  ;;  %v340_v0 = vsub.s32 %v337_v61, %v339_v62  ;;  %v353_v1 = vsub.s32 0, %v339_v62  ;;  %v357_v2 = vsub.s32 1, %v339_v62 }
  0x48   :  { %v221_v15 = vadd.f32 %v220_v11, %v219_v12  ;;  %541 = vmatpush3.msra.mxu1 %v375_v47 }
  0x49   :  { %v158_v14 = vadd.f32 %v157_v10, %v156_v6  ;;  %542 = vmatprep.subr.mxu1 %v390_v48  ;;  %v230_v6 = vld [vmem:[#allocation2] sm:$0xf]  ;;  %v354_v9 = vrot.slane %v349_v4, %v353_v1  ;;  %v358_v10 = vrot.slane %v349_v4, %v357_v2 }
  0x4a   :  { %v223_v16 = vadd.f32 %v222_v13, %v221_v15  ;;  %543 = vmatpush3.msra.mxu1 %v374_v49 }
  0x4b   :  { %v159_v17 = vrot.slane %v158_v14, 1  ;;  %544 = vmatprep.subr.mxu1 %v389_v50  ;;  %v359_v13 = vcombine.low %v354_v9, %v358_v10 }
  0x4c   :  { %v224_v18 = vrot.slane %v223_v16, 4  ;;  %545 = vmatpush3.msra.mxu1 %v373_v51 }
  0x4d   :  { %v160_v20 = vadd.f32 %v159_v17, %v158_v14  ;;  %546 = vmatprep.subr.mxu1 %v388_v52  ;;  %v366_v14 = vrot.slane %v359_v13, %v340_v0 }
  0x4e   :  { %v225_v19 = vadd.f32 %v224_v18, %v223_v16  ;;  %547 = vmatpush3.msra.mxu1 %v372_v53 }
  0x4f   :  { %v231_v24 = vpack.c.bf16 %v160_v20, %v160_v20  ;;  %548 = vmatprep.subr.mxu1 %v387_v54 }
  0x50   :  { %v226_v21 = vrot.slane %v225_v19, 2  ;;  %549 = vmatpush3.msra.mxu1 %v371_v55 }
  0x51   :  { %v243_v27 = vunpack.c.l.b16 %v231_v24  ;;  %550 = vmatprep.subr.mxu1 %v386_v56 }
  0x52   :  { %v227_v22 = vadd.f32 %v226_v21, %v225_v19  ;;  %551 = vmatpush3.msra.mxu1 %v370_v57  ;;  %v519_v21 = vld [vmem:[%s1021_s4] ss:$0 sm:$0xff] }
  0x54   :  { %v228_v23 = vrot.slane %v227_v22, 1 }
  0x56   :  { %v229_v25 = vadd.f32 %v228_v23, %v227_v22 }
  0x58   :  { %v232_v26 = vpack.c.bf16 %v229_v25, %v229_v25 }
  0x5a   :  { %v244_v28 = vunpack.c.l.b16 %v232_v26 }
  0x5c   :  { %v246_v29 = vsel %vm245_vm1, %v244_v28, %v243_v27 }
  0x5d   :  { %v247_v30 = vpack.c.b16 %v246_v29, %v246_v29 }
  0x5f   :  { %518 = vmatmul.mubr.msk.bf16.vlgmr.msra.gmra.mxu0 %vm91_vm0, %v247_v30 }
 0x11f   :  { %v325_v63 = vpop.f32.mrf.mxu0 }
 0x121   :  { %v327_v3 = vpop.f32.mrf.mxu0 }
 0x122   :  { %v334_v5 = vcombine.low %v325_v63, %v327_v3 }
 0x123   :  { %v329_v7 = vpop.f32.mrf.mxu0 }
 0x124   :  { %v341_v8 = vrot.slane %v334_v5, %v340_v0 }
 0x125   :  { %v330_v11 = vpop.f32.mrf.mxu0 }
 0x126   :  { %v343_v12 = vadd.f32 %v341_v8, %v230_v6 }
 0x128   :  { %344 = vst [vmem:[#allocation2] sm:$0xf] %v343_v12 }
 0x12f   :  { %v348_v15 = vld [vmem:[#allocation2] sm:$0xf] }
 0x130   :  { %v368_v16 = vadd.f32 %v366_v14, %v348_v15 }
 0x132   :  { %v369_v17 = vmax.f32 %v368_v16, 0.0 }
 0x134   :  { %v416_v18 = vrot.slane %v369_v17, %v340_v0 }
 0x136   :  { %v417_v19 = vcombine.high %v416_v18, %v416_v18 }
 0x138   :  { %484 = vmatprep.mubr.f32.mxu1 %v417_v19 }
 0x139   :  { %485 = vmatmul.mubr.f32.vlgmr.msra.gmra.mxu1 %v416_v18 }
 0x1f9   :  { %v552_v20 = vpop.f32.mrf.mxu1 }
 0x1fb   :  { %v553_v22 = vpop.f32.mrf.mxu1 }
 0x1fc   :  { %v554_v23 = vadd.f32 %v553_v22, %v552_v20 }
 0x1fe   :  { %v487_v24 = vadd.f32 %v554_v23, %v519_v21 }
 0x200   :  { %v490_v25 = vsub.f32 0.0, %v487_v24 }
 0x202   :  { %v491_v26 = vmul.f32 1.442695, %v490_v25 }
 0x204   :  { %571 = vpow2.f32 %v491_v26 }
 0x211   :  { %v572_v27 = vpop.eup %571 }
 0x212   :  { %v493_v28 = vadd.f32 1.0, %v572_v27 }
 0x214   :  { %573 = vrcp.f32 %v493_v28 }
 0x221   :  { %v574_v29 = vpop.eup %573 }
 0x222   :  { %495 = vst [vmem:[#allocation3] sm:$0x3] %v574_v29 }
 0x223   :  { %586 = shalt.err (!%p583_p4)
}
 0x224   :  { %505 = dma.vmem_to_hbm [thread:$0]  %s503_s19, 32, %s1022_s5, [#allocation4]  }
 0x225   :  { %595 = dma.done.wait [#allocation4], 32  }
 0x226   :  { %596 = vsyncadd [#allocation4], 4294967264 }
 0x227   :  { %509 = vsyncpa [#allocation4], 1 }

</bundles_post_ra>
